<compile_context>
chip_gen: v7x
topology: tpu7x:2x2x1
jax: 0.10.0
libtpu: 0.0.40
codegen_flags: <defaults>
</compile_context>

<pallas_src>
import functools

import jax
import jax.numpy as jnp
from jax.experimental import pallas as pl
from jax.experimental.pallas import tpu as pltpu

BN_EPS = 1e-5
LANE = 128


def _round_up(v, m):
    return ((v + m - 1) // m) * m


def fcnn_kernel(x_ref,
                w1_ref, b1_ref,
                w2_ref, b2_ref,
                w3_ref, b3_ref,
                w4_ref, b4_ref,
                w5r_ref, b5_ref,
                o_ref):
    # One batch tile per grid step.  Weights stay resident in VMEM across the
    # whole grid (constant index_maps), so per-step DMA is only the x tile in
    # and the output tile out, double-buffered by the Pallas pipeline.
    x = x_ref[...]                                            # bf16 [tile_n, in_hw]

    # linear1 + relu            (dropout = identity in eval mode)
    h = jnp.dot(x, w1_ref[...], preferred_element_type=jnp.float32) + b1_ref[...]
    h = jnp.maximum(h, 0.0)

    # linear2 (BatchNorm pre-folded into w2/b2) + relu
    h = jnp.dot(h.astype(jnp.bfloat16), w2_ref[...],
                preferred_element_type=jnp.float32) + b2_ref[...]
    h = jnp.maximum(h, 0.0)

    # linear3 + relu            (dropout = identity)
    h = jnp.dot(h.astype(jnp.bfloat16), w3_ref[...],
                preferred_element_type=jnp.float32) + b3_ref[...]
    h = jnp.maximum(h, 0.0)

    # linear4 + relu            (dropout = identity)
    h = jnp.dot(h.astype(jnp.bfloat16), w4_ref[...],
                preferred_element_type=jnp.float32) + b4_ref[...]
    h = jnp.maximum(h, 0.0)

    # linear5 (out_features=1): multiply + lane reduce on VPU/XLU instead of
    # burning an MXU pass whose result path would be 1/128 occupied.
    y = jnp.sum(h * w5r_ref[...], axis=-1, keepdims=True) + b5_ref[...]

    # NOTE: output last dim is 1 -> masked store; accepted knowingly, the
    # kernel is bound by the x DMA / matmuls, not the 4 B/row output.
    o_ref[...] = y.astype(o_ref.dtype)


def prepare_params(p):
    """Fold BN into linear2, zero-pad hidden widths to 128-lane multiples,
    pre-transpose the 1-wide head row, and cast MXU weights to bf16."""
    scale = p["bn_g"] * jax.lax.rsqrt(p["bn_rv"] + BN_EPS)          # [1, d2]
    w2f = p["w2"] * scale                                           # scale columns
    b2f = (p["b2"] - p["bn_rm"]) * scale + p["bn_b"]

    def pad_to(a, rows, cols):
        return jnp.pad(a, ((0, rows - a.shape[0]), (0, cols - a.shape[1])))

    in_hw = p["w1"].shape[0]
    d1, d2, d3, d4 = (p["w1"].shape[1], p["w2"].shape[1],
                      p["w3"].shape[1], p["w4"].shape[1])
    D1, D2, D3, D4 = (_round_up(d, LANE) for d in (d1, d2, d3, d4))

    # Zero padding is exact: padded lanes get weight 0 + bias 0 -> relu(0)=0,
    # and padded K rows of the next weight are 0, so nothing leaks.
    return {
        "w1": pad_to(p["w1"], in_hw, D1).astype(jnp.bfloat16),
        "b1": pad_to(p["b1"], 1, D1),
        "w2": pad_to(w2f, D1, D2).astype(jnp.bfloat16),
        "b2": pad_to(b2f, 1, D2),
        "w3": pad_to(p["w3"], D2, D3).astype(jnp.bfloat16),
        "b3": pad_to(p["b3"], 1, D3),
        "w4": pad_to(p["w4"], D3, D4).astype(jnp.bfloat16),
        "b4": pad_to(p["b4"], 1, D4),
        "w5r": pad_to(p["w5"].T, 1, D4),                            # f32 row for VPU reduce
        "b5": p["b5"],                                              # [1, 1] f32
    }


def fcnn_forward(x, kparams, *, tile_n=512):
    """x: [N, in_hw] float32.  kparams: output of prepare_params()."""
    n, in_hw = x.shape
    # Batch tile: multiple of 8 sublanes, never larger than (padded) N.
    tile_n = min(tile_n, _round_up(n, 8))
    n_pad = _round_up(n, tile_n)

    xb = x.astype(jnp.bfloat16)
    if n_pad != n:
        xb = jnp.pad(xb, ((0, n_pad - n), (0, 0)))

    weight_args = (kparams["w1"], kparams["b1"], kparams["w2"], kparams["b2"],
                   kparams["w3"], kparams["b3"], kparams["w4"], kparams["b4"],
                   kparams["w5r"], kparams["b5"])

    x_spec = pl.BlockSpec((tile_n, in_hw), lambda i: (i, 0))
    # Whole-array blocks with constant index_map -> weights stay VMEM-resident
    # across grid steps.  ndim bound via default arg (no late-binding bug).
    weight_specs = [pl.BlockSpec(a.shape, lambda i, nd=a.ndim: (0,) * nd)
                    for a in weight_args]
    out_spec = pl.BlockSpec((tile_n, 1), lambda i: (i, 0))

    out = pl.pallas_call(
        fcnn_kernel,
        out_shape=jax.ShapeDtypeStruct((n_pad, 1), jnp.float32),
        grid=(n_pad // tile_n,),
        in_specs=[x_spec] + weight_specs,
        out_specs=out_spec,
        compiler_params=pltpu.CompilerParams(
            # Batch tiles are independent -> shard across both TensorCores on
            # v7x; harmless on single-TC v5e/v6e.
            dimension_semantics=("parallel",)),
    )(xb, *weight_args)
    return out[:n]


def init_params(key, in_hw=32, hidden_size=32):
    """Deterministic synthetic parameters matching FCNN(n_layers=5) shapes.

    PyTorch nn.Linear(in, out) has weight [out, in]; stored transposed as
    [in, out].  Biases / BN vectors stored as [1, out] rows.
    """
    h = hidden_size
    dims = [(in_hw, 2 * h), (2 * h, 3 * h), (3 * h, 2 * h),
            (2 * h, h // 2), (h // 2, 1)]
    params = {}
    keys = jax.random.split(key, 2 * len(dims) + 2)
    for i, (din, dout) in enumerate(dims, start=1):
        bound = 1.0 / jnp.sqrt(jnp.float32(din))
        params[f"w{i}"] = jax.random.uniform(
            keys[2 * i - 2], (din, dout), jnp.float32, -bound, bound)
        params[f"b{i}"] = jax.random.uniform(
            keys[2 * i - 1], (1, dout), jnp.float32, -bound, bound)
    # BatchNorm1d(3*hidden): default init gamma=1, beta=0, rm=0, rv=1
    bn_dim = 3 * h
    params["bn_g"] = jnp.ones((1, bn_dim), jnp.float32)
    params["bn_b"] = jnp.zeros((1, bn_dim), jnp.float32)
    params["bn_rm"] = jnp.zeros((1, bn_dim), jnp.float32)
    params["bn_rv"] = jnp.ones((1, bn_dim), jnp.float32)
    return params


def fcnn_reference(x, p):
    """Pure-JAX f32 reference (eval mode) for correctness checking."""
    relu = lambda v: jnp.maximum(v, 0.0)
    h = relu(x @ p["w1"] + p["b1"])
    z = h @ p["w2"] + p["b2"]
    z = (z - p["bn_rm"]) * (p["bn_g"] / jnp.sqrt(p["bn_rv"] + BN_EPS)) + p["bn_b"]
    h = relu(z)
    h = relu(h @ p["w3"] + p["b3"])
    h = relu(h @ p["w4"] + p["b4"])
    return h @ p["w5"] + p["b5"]


if __name__ == "__main__":
    key = jax.random.PRNGKey(0)
    k_x, k_p, k_x2 = jax.random.split(key, 3)

    batch, in_hw, hidden = 8, 32, 32
    x = jax.random.normal(k_x, (batch, in_hw), jnp.float32)
    params = init_params(k_p, in_hw=in_hw, hidden_size=hidden)
    kparams = prepare_params(params)

    out = fcnn_forward(x, kparams)
    out = jax.block_until_ready(out)
    ref = fcnn_reference(x, params)
    assert out.shape == (batch, 1)
    # bf16 MXU inputs (f32 accumulate) vs a pure-f32 reference -> loosened tol.
    assert jnp.allclose(out, ref, atol=2e-2, rtol=2e-2), "mismatch vs reference"

    # Second check: exercises the multi-step batch grid + N-padding path.
    x2 = jax.random.normal(k_x2, (200, in_hw), jnp.float32)
    out2 = jax.block_until_ready(fcnn_forward(x2, kparams, tile_n=64))
    ref2 = fcnn_reference(x2, params)
    assert out2.shape == (200, 1)
    assert jnp.allclose(out2, ref2, atol=2e-2, rtol=2e-2), "mismatch vs reference (tiled)"

    print("KERNEL_OK")
</pallas_src>

<mosaic_0001>
module attributes {stable_mosaic.version = 11 : i64} {
  func.func @fcnn_kernel(%arg0: i32, %arg1: memref<8x32xbf16, #tpu.memory_space<vmem>>, %arg2: memref<32x128xbf16, #tpu.memory_space<vmem>>, %arg3: memref<1x128xf32, #tpu.memory_space<vmem>>, %arg4: memref<128x128xbf16, #tpu.memory_space<vmem>>, %arg5: memref<1x128xf32, #tpu.memory_space<vmem>>, %arg6: memref<128x128xbf16, #tpu.memory_space<vmem>>, %arg7: memref<1x128xf32, #tpu.memory_space<vmem>>, %arg8: memref<128x128xbf16, #tpu.memory_space<vmem>>, %arg9: memref<1x128xf32, #tpu.memory_space<vmem>>, %arg10: memref<1x128xf32, #tpu.memory_space<vmem>>, %arg11: memref<1x1xf32, #tpu.memory_space<vmem>>, %arg12: memref<8x1xf32, #tpu.memory_space<vmem>>) attributes {dimension_semantics = [#tpu.dimension_semantics<parallel>], iteration_bounds = array<i64: 1>, scalar_prefetch = 0 : i64, scratch_operands = 0 : i64, tpu.core_type = #tpu.core_type<tc>, window_params = [{transform_indices = @transform_0, window_bounds = array<i64: 8, 32>}, {pipeline_mode = #tpu.pipeline_mode<synchronous>, transform_indices = @transform_1, window_bounds = array<i64: 32, 128>}, {pipeline_mode = #tpu.pipeline_mode<synchronous>, transform_indices = @transform_2, window_bounds = array<i64: 1, 128>}, {pipeline_mode = #tpu.pipeline_mode<synchronous>, transform_indices = @transform_3, window_bounds = array<i64: 128, 128>}, {pipeline_mode = #tpu.pipeline_mode<synchronous>, transform_indices = @transform_4, window_bounds = array<i64: 1, 128>}, {pipeline_mode = #tpu.pipeline_mode<synchronous>, transform_indices = @transform_5, window_bounds = array<i64: 128, 128>}, {pipeline_mode = #tpu.pipeline_mode<synchronous>, transform_indices = @transform_6, window_bounds = array<i64: 1, 128>}, {pipeline_mode = #tpu.pipeline_mode<synchronous>, transform_indices = @transform_7, window_bounds = array<i64: 128, 128>}, {pipeline_mode = #tpu.pipeline_mode<synchronous>, transform_indices = @transform_8, window_bounds = array<i64: 1, 128>}, {pipeline_mode = #tpu.pipeline_mode<synchronous>, transform_indices = @transform_9, window_bounds = array<i64: 1, 128>}, {pipeline_mode = #tpu.pipeline_mode<synchronous>, transform_indices = @transform_10, window_bounds = array<i64: 1, 1>}, {transform_indices = @transform_11, window_bounds = array<i64: 8, 1>}]} {
    %c0 = arith.constant 0 : index
    %c0_0 = arith.constant 0 : index
    %0 = vector.load %arg1[%c0, %c0_0] : memref<8x32xbf16, #tpu.memory_space<vmem>>, vector<8x32xbf16>
    %c0_1 = arith.constant 0 : index
    %c0_2 = arith.constant 0 : index
    %1 = vector.load %arg2[%c0_1, %c0_2] : memref<32x128xbf16, #tpu.memory_space<vmem>>, vector<32x128xbf16>
    %cst = arith.constant dense<0.000000e+00> : vector<8x128xf32>
    %2 = tpu.matmul %0, %1, %cst {dimension_numbers = #tpu.dot_dimension_numbers<[1], [0], [0], [1], [0, 0, 1, 1], [], []>} : vector<8x32xbf16>, vector<32x128xbf16>, vector<8x128xf32> -> vector<8x128xf32>
    %c0_3 = arith.constant 0 : index
    %c0_4 = arith.constant 0 : index
    %3 = vector.load %arg3[%c0_3, %c0_4] : memref<1x128xf32, #tpu.memory_space<vmem>>, vector<1x128xf32>
    %4 = vector.broadcast %3 : vector<1x128xf32> to vector<8x128xf32>
    %5 = arith.addf %2, %4 : vector<8x128xf32>
    %cst_5 = arith.constant 0.000000e+00 : f32
    %6 = vector.broadcast %cst_5 : f32 to vector<8x128xf32>
    %7 = arith.maximumf %5, %6 : vector<8x128xf32>
    %8 = arith.truncf %7 : vector<8x128xf32> to vector<8x128xbf16>
    %c0_6 = arith.constant 0 : index
    %c0_7 = arith.constant 0 : index
    %9 = vector.load %arg4[%c0_6, %c0_7] : memref<128x128xbf16, #tpu.memory_space<vmem>>, vector<128x128xbf16>
    %cst_8 = arith.constant dense<0.000000e+00> : vector<8x128xf32>
    %10 = tpu.matmul %8, %9, %cst_8 {dimension_numbers = #tpu.dot_dimension_numbers<[1], [0], [0], [1], [0, 0, 1, 1], [], []>} : vector<8x128xbf16>, vector<128x128xbf16>, vector<8x128xf32> -> vector<8x128xf32>
    %c0_9 = arith.constant 0 : index
    %c0_10 = arith.constant 0 : index
    %11 = vector.load %arg5[%c0_9, %c0_10] : memref<1x128xf32, #tpu.memory_space<vmem>>, vector<1x128xf32>
    %12 = vector.broadcast %11 : vector<1x128xf32> to vector<8x128xf32>
    %13 = arith.addf %10, %12 : vector<8x128xf32>
    %cst_11 = arith.constant 0.000000e+00 : f32
    %14 = vector.broadcast %cst_11 : f32 to vector<8x128xf32>
    %15 = arith.maximumf %13, %14 : vector<8x128xf32>
    %16 = arith.truncf %15 : vector<8x128xf32> to vector<8x128xbf16>
    %c0_12 = arith.constant 0 : index
    %c0_13 = arith.constant 0 : index
    %17 = vector.load %arg6[%c0_12, %c0_13] : memref<128x128xbf16, #tpu.memory_space<vmem>>, vector<128x128xbf16>
    %cst_14 = arith.constant dense<0.000000e+00> : vector<8x128xf32>
    %18 = tpu.matmul %16, %17, %cst_14 {dimension_numbers = #tpu.dot_dimension_numbers<[1], [0], [0], [1], [0, 0, 1, 1], [], []>} : vector<8x128xbf16>, vector<128x128xbf16>, vector<8x128xf32> -> vector<8x128xf32>
    %c0_15 = arith.constant 0 : index
    %c0_16 = arith.constant 0 : index
    %19 = vector.load %arg7[%c0_15, %c0_16] : memref<1x128xf32, #tpu.memory_space<vmem>>, vector<1x128xf32>
    %20 = vector.broadcast %19 : vector<1x128xf32> to vector<8x128xf32>
    %21 = arith.addf %18, %20 : vector<8x128xf32>
    %cst_17 = arith.constant 0.000000e+00 : f32
    %22 = vector.broadcast %cst_17 : f32 to vector<8x128xf32>
    %23 = arith.maximumf %21, %22 : vector<8x128xf32>
    %24 = arith.truncf %23 : vector<8x128xf32> to vector<8x128xbf16>
    %c0_18 = arith.constant 0 : index
    %c0_19 = arith.constant 0 : index
    %25 = vector.load %arg8[%c0_18, %c0_19] : memref<128x128xbf16, #tpu.memory_space<vmem>>, vector<128x128xbf16>
    %cst_20 = arith.constant dense<0.000000e+00> : vector<8x128xf32>
    %26 = tpu.matmul %24, %25, %cst_20 {dimension_numbers = #tpu.dot_dimension_numbers<[1], [0], [0], [1], [0, 0, 1, 1], [], []>} : vector<8x128xbf16>, vector<128x128xbf16>, vector<8x128xf32> -> vector<8x128xf32>
    %c0_21 = arith.constant 0 : index
    %c0_22 = arith.constant 0 : index
    %27 = vector.load %arg9[%c0_21, %c0_22] : memref<1x128xf32, #tpu.memory_space<vmem>>, vector<1x128xf32>
    %28 = vector.broadcast %27 : vector<1x128xf32> to vector<8x128xf32>
    %29 = arith.addf %26, %28 : vector<8x128xf32>
    %cst_23 = arith.constant 0.000000e+00 : f32
    %30 = vector.broadcast %cst_23 : f32 to vector<8x128xf32>
    %31 = arith.maximumf %29, %30 : vector<8x128xf32>
    %c0_24 = arith.constant 0 : index
    %c0_25 = arith.constant 0 : index
    %32 = vector.load %arg10[%c0_24, %c0_25] : memref<1x128xf32, #tpu.memory_space<vmem>>, vector<1x128xf32>
    %33 = vector.broadcast %32 : vector<1x128xf32> to vector<8x128xf32>
    %34 = arith.mulf %31, %33 : vector<8x128xf32>
    %cst_26 = arith.constant dense<0.000000e+00> : vector<8xf32>
    %35 = vector.multi_reduction <add>, %34, %cst_26 [1] : vector<8x128xf32> to vector<8xf32>
    %36 = vector.shape_cast %35 : vector<8xf32> to vector<8x1xf32>
    %c0_27 = arith.constant 0 : index
    %c0_28 = arith.constant 0 : index
    %37 = vector.load %arg11[%c0_27, %c0_28] : memref<1x1xf32, #tpu.memory_space<vmem>>, vector<1x1xf32>
    %38 = vector.broadcast %37 : vector<1x1xf32> to vector<8x1xf32>
    %39 = arith.addf %36, %38 : vector<8x1xf32>
    %c0_29 = arith.constant 0 : index
    %c0_30 = arith.constant 0 : index
    %40 = vector.load %arg12[%c0_29, %c0_30] : memref<8x1xf32, #tpu.memory_space<vmem>>, vector<8x1xf32>
    tpu.vector_store %arg12[%c0_29, %c0_30], %39 {strides = array<i32>} : memref<8x1xf32, #tpu.memory_space<vmem>>, vector<8x1xf32>,
    return
  }
  func.func @transform_0(%arg0: i32) -> (i32, i32) {
    %c0_i32 = arith.constant 0 : i32
    %c0_i32_0 = arith.constant 0 : i32
    return %arg0, %c0_i32 : i32, i32
  }
  func.func @transform_1(%arg0: i32) -> (i32, i32) {
    %c0_i32 = arith.constant 0 : i32
    %c0_i32_0 = arith.constant 0 : i32
    %c0_i32_1 = arith.constant 0 : i32
    return %c0_i32, %c0_i32_0 : i32, i32
  }
  func.func @transform_2(%arg0: i32) -> (i32, i32) {
    %c0_i32 = arith.constant 0 : i32
    %c0_i32_0 = arith.constant 0 : i32
    %c0_i32_1 = arith.constant 0 : i32
    return %c0_i32, %c0_i32_0 : i32, i32
  }
  func.func @transform_3(%arg0: i32) -> (i32, i32) {
    %c0_i32 = arith.constant 0 : i32
    %c0_i32_0 = arith.constant 0 : i32
    %c0_i32_1 = arith.constant 0 : i32
    return %c0_i32, %c0_i32_0 : i32, i32
  }
  func.func @transform_4(%arg0: i32) -> (i32, i32) {
    %c0_i32 = arith.constant 0 : i32
    %c0_i32_0 = arith.constant 0 : i32
    %c0_i32_1 = arith.constant 0 : i32
    return %c0_i32, %c0_i32_0 : i32, i32
  }
  func.func @transform_5(%arg0: i32) -> (i32, i32) {
    %c0_i32 = arith.constant 0 : i32
    %c0_i32_0 = arith.constant 0 : i32
    %c0_i32_1 = arith.constant 0 : i32
    return %c0_i32, %c0_i32_0 : i32, i32
  }
  func.func @transform_6(%arg0: i32) -> (i32, i32) {
    %c0_i32 = arith.constant 0 : i32
    %c0_i32_0 = arith.constant 0 : i32
    %c0_i32_1 = arith.constant 0 : i32
    return %c0_i32, %c0_i32_0 : i32, i32
  }
  func.func @transform_7(%arg0: i32) -> (i32, i32) {
    %c0_i32 = arith.constant 0 : i32
    %c0_i32_0 = arith.constant 0 : i32
    %c0_i32_1 = arith.constant 0 : i32
    return %c0_i32, %c0_i32_0 : i32, i32
  }
  func.func @transform_8(%arg0: i32) -> (i32, i32) {
    %c0_i32 = arith.constant 0 : i32
    %c0_i32_0 = arith.constant 0 : i32
    %c0_i32_1 = arith.constant 0 : i32
    return %c0_i32, %c0_i32_0 : i32, i32
  }
  func.func @transform_9(%arg0: i32) -> (i32, i32) {
    %c0_i32 = arith.constant 0 : i32
    %c0_i32_0 = arith.constant 0 : i32
    %c0_i32_1 = arith.constant 0 : i32
    return %c0_i32, %c0_i32_0 : i32, i32
  }
  func.func @transform_10(%arg0: i32) -> (i32, i32) {
    %c0_i32 = arith.constant 0 : i32
    %c0_i32_0 = arith.constant 0 : i32
    %c0_i32_1 = arith.constant 0 : i32
    return %c0_i32, %c0_i32_0 : i32, i32
  }
  func.func @transform_11(%arg0: i32) -> (i32, i32) {
    %c0_i32 = arith.constant 0 : i32
    %c0_i32_0 = arith.constant 0 : i32
    return %arg0, %c0_i32 : i32, i32
  }
}

</mosaic_0001>

<bundles_post_ra>
// kernel: tpu_custom_call.1
= control target key start
LH: loop header
LB: loop body
LE: loop exit
PB: predicated region body
PF: predicated region fallthrough
CT: control target
= control target key end

     0   :  { %s1020_s0 = inlined_call_operand.hbm [shape: bf16[8,32], index: 0, kind: input, shape index: {}]   ;;  %s1021_s1 = inlined_call_operand.hbm [shape: bf16[32,128], index: 1, kind: input, shape index: {}]   ;;  %s1022_s2 = inlined_call_operand.vmem [shape: f32[1,128], index: 2, kind: input, shape index: {}]   ;;  %s1023_s3 = inlined_call_operand.hbm [shape: bf16[128,128], index: 3, kind: input, shape index: {}]   ;;  %s1024_s4 = inlined_call_operand.vmem [shape: f32[1,128], index: 4, kind: input, shape index: {}]   ;;  %s1025_s5 = inlined_call_operand.hbm [shape: bf16[128,128], index: 5, kind: input, shape index: {}]   ;;  %s1026_s6 = inlined_call_operand.vmem [shape: f32[1,128], index: 6, kind: input, shape index: {}]   ;;  %s1027_s7 = inlined_call_operand.hbm [shape: bf16[128,128], index: 7, kind: input, shape index: {}]   ;;  %s1028_s8 = inlined_call_operand.vmem [shape: f32[1,128], index: 8, kind: input, shape index: {}]   ;;  %s1029_s9 = inlined_call_operand.vmem [shape: f32[1,128], index: 9, kind: input, shape index: {}]   ;;  %s1030_s10 = inlined_call_operand.<no memory space> [shape: f32[1,1], index: 10, kind: input, shape index: {}]   ;;  %s1031_s11 = inlined_call_operand.vmem [shape: f32[8,1], index: 11, kind: output, shape index: {}]  }
   0x1   :  { %v16_v0 = vstv %s1030_s10 }
   0x2   :  { %17 = vst [vmem:[#allocation2] sm:$0x1] %v16_v0 }
   0x3   :  { %18 = vsyncpa [#allocation4], 0 }
   0x4   :  { %19 = vsyncpa [#allocation6], 0 }
   0x5   :  { %20 = vsyncpa [#allocation9], 0  ;;  %s824_s19 = smov [#allocation5]   ;;  %s708_s23 = scalar_lea.hbm %s1021_s1, 256 }
   0x6   :  { %s36_s20 = sshll.u32 %s824_s19, 4  ;;  %p709_p0 = scmp.ne.s32.totalorder %s1021_s1, %s708_s23  ;;  %s37_s20 = int_to_ptr.vmem [resolvable:$true] %s36_s20 }
   0x7   :  { %p712_p1 = scmp.lt.u32.totalorder %s708_s23, %s1021_s1 }
   0x9   :  { %p714_p2 = pnand %p712_p1, %p709_p0 }
   0xb   :  { %717 = shalt.err (!%p714_p2)
}
   0xc   :  { %s718_s10 = scalar_lea.vmem %s37_s20, 256  ;;  %p723_p4 = scmp.lt.s32.totalorder %s37_s20, %s37_s20 }
   0xd   :  { %p719_p3 = scmp.ne.s32.totalorder %s37_s20, %s718_s10  ;;  %p724_p5 = scmp.lt.s32.totalorder %s718_s10, %s718_s10 }
   0xf   :  { %p725_p6 = por %p724_p5, %p723_p4 }
  0x11   :  { %p726_p7 = pnand %p725_p6, %p719_p3 }
  0x13   :  { %729 = shalt.err (!%p726_p7)
}
  0x14   :  { %s825_s28 = smov 64   ;;  %s826_s29 = smov 4  }
  0x15   :  { %42 = dma.hbm_to_vmem [thread:$0]  %s1021_s1, 256, %s37_s20, [#allocation6], %s825_s28, %s825_s28, %s826_s29  }
  0x16   :  { %s827_s13 = smov [#allocation8]   ;;  %s828_s15 = smov [#allocation3]  }
  0x17   :  { %s64_s14 = sshll.u32 %s827_s13, 4  ;;  %s27_s16 = sshll.u32 %s828_s15, 4  ;;  %s65_s14 = int_to_ptr.vmem [resolvable:$true] %s64_s14  ;;  %s28_s16 = int_to_ptr.vmem [resolvable:$true] %s27_s16 }
  0x18   :  { %s730_s19 = scalar_lea.hbm %s1025_s5, 1024 }
  0x19   :  { %p731_p8 = scmp.ne.s32.totalorder %s1025_s5, %s730_s19  ;;  %p734_p9 = scmp.lt.u32.totalorder %s730_s19, %s1025_s5 }
  0x1b   :  { %p736_p10 = pnand %p734_p9, %p731_p8 }
  0x1d   :  { %739 = shalt.err (!%p736_p10)
}
  0x1e   :  { %s740_s1 = scalar_lea.vmem %s65_s14, 1024  ;;  %p745_p12 = scmp.lt.s32.totalorder %s65_s14, %s65_s14 }
  0x1f   :  { %p741_p11 = scmp.ne.s32.totalorder %s65_s14, %s740_s1  ;;  %p746_p13 = scmp.lt.s32.totalorder %s740_s1, %s740_s1 }
  0x21   :  { %p747_p0 = por %p746_p13, %p745_p12 }
  0x23   :  { %p748_p1 = pnand %p747_p0, %p741_p11 }
  0x25   :  { %751 = shalt.err (!%p748_p1)
}
  0x26   :  { %70 = dma.hbm_to_vmem [thread:$0]  %s1025_s5, 1024, %s65_s14, [#allocation9], %s825_s28, %s825_s28, %s826_s29  }
  0x27   :  { %s752_s10 = scalar_lea.hbm %s1020_s0, 64 }
  0x28   :  { %p753_p2 = scmp.ne.s32.totalorder %s1020_s0, %s752_s10  ;;  %p756_p3 = scmp.lt.u32.totalorder %s752_s10, %s1020_s0 }
  0x2a   :  { %p758_p4 = pnand %p756_p3, %p753_p2 }
  0x2c   :  { %761 = shalt.err (!%p758_p4)
}
  0x2d   :  { %s762_s17 = scalar_lea.vmem %s28_s16, 64  ;;  %p767_p6 = scmp.lt.s32.totalorder %s28_s16, %s28_s16 }
  0x2e   :  { %p763_p5 = scmp.ne.s32.totalorder %s28_s16, %s762_s17  ;;  %p768_p7 = scmp.lt.s32.totalorder %s762_s17, %s762_s17 }
  0x30   :  { %p769_p8 = por %p768_p7, %p767_p6 }
  0x32   :  { %p770_p9 = pnand %p769_p8, %p763_p5 }
  0x34   :  { %773 = shalt.err (!%p770_p9)
}
  0x35   :  { %30 = dma.hbm_to_vmem [thread:$0]  %s1020_s0, 64, %s28_s16, [#allocation4]  }
  0x36   :  { %s829_s18 = smov [#allocation7]   ;;  %s830_s21 = smov [#allocation10]  }
  0x37   :  { %s50_s19 = sshll.u32 %s829_s18, 4  ;;  %s78_s22 = sshll.u32 %s830_s21, 4  ;;  %s51_s19 = int_to_ptr.vmem [resolvable:$true] %s50_s19  ;;  %s79_s22 = int_to_ptr.vmem [resolvable:$true] %s78_s22 }
  0x38   :  { %s774_s1 = scalar_lea.hbm %s1023_s3, 1024 }
  0x39   :  { %p775_p10 = scmp.ne.s32.totalorder %s1023_s3, %s774_s1  ;;  %p778_p11 = scmp.lt.u32.totalorder %s774_s1, %s1023_s3 }
  0x3b   :  { %p780_p12 = pnand %p778_p11, %p775_p10 }
  0x3d   :  { %783 = shalt.err (!%p780_p12)
}
  0x3e   :  { %s784_s0 = scalar_lea.vmem %s51_s19, 1024  ;;  %p789_p0 = scmp.lt.s32.totalorder %s51_s19, %s51_s19 }
  0x3f   :  { %p785_p13 = scmp.ne.s32.totalorder %s51_s19, %s784_s0  ;;  %p790_p1 = scmp.lt.s32.totalorder %s784_s0, %s784_s0 }
  0x41   :  { %p791_p2 = por %p790_p1, %p789_p0 }
  0x43   :  { %p792_p3 = pnand %p791_p2, %p785_p13 }
  0x45   :  { %795 = shalt.err (!%p792_p3)
}
  0x46   :  { %56 = dma.hbm_to_vmem [thread:$0]  %s1023_s3, 1024, %s51_s19, [#allocation6], %s825_s28, %s825_s28, %s826_s29  }
  0x47   :  { %s796_s13 = scalar_lea.hbm %s1027_s7, 1024 }
  0x48   :  { %p797_p4 = scmp.ne.s32.totalorder %s1027_s7, %s796_s13  ;;  %p800_p5 = scmp.lt.u32.totalorder %s796_s13, %s1027_s7 }
  0x4a   :  { %p802_p6 = pnand %p800_p5, %p797_p4 }
  0x4c   :  { %805 = shalt.err (!%p802_p6)
}
  0x4d   :  { %s806_s18 = scalar_lea.vmem %s79_s22, 1024  ;;  %p811_p8 = scmp.lt.s32.totalorder %s79_s22, %s79_s22 }
  0x4e   :  { %p807_p7 = scmp.ne.s32.totalorder %s79_s22, %s806_s18  ;;  %p812_p9 = scmp.lt.s32.totalorder %s806_s18, %s806_s18 }
  0x50   :  { %p813_p10 = por %p812_p9, %p811_p8 }
  0x52   :  { %p814_p11 = pnand %p813_p10, %p807_p7 }
  0x54   :  { %817 = shalt.err (!%p814_p11)
}
  0x55   :  { %84 = dma.hbm_to_vmem [thread:$0]  %s1027_s7, 1024, %s79_s22, [#allocation9], %s825_s28, %s825_s28, %s826_s29  }
  0x56   :  { %818 = dma.done.wait [#allocation4], 64  }
  0x57   :  { %819 = vsyncadd [#allocation4], 4294967232 }
  0x58   :  { %820 = dma.done.wait [#allocation6], 1280  }
  0x59   :  { %821 = vsyncadd [#allocation6], 4294966016 }
  0x5a   :  { %822 = dma.done.wait [#allocation9], 2048  }
  0x5b   :  { %823 = vsyncadd [#allocation9], 4294965248  ;;  %v831_v1 = vmov 0.0   ;;  %vm832_vm0 = vmmov 0   ;;  %v682_v2 = vld [vmem:[#allocation5] sm:$0xff]   ;;  %v683_v3 = vld [vmem:[#allocation5 + $0x8] sm:$0xff]  }
  0x5c   :  { %605 = vmatprep.subr.bf16.mxu0 %v831_v1  ;;  %609 = vmatprep.mubr.msk.bf16.mxu0 %vm832_vm0, %v831_v1  ;;  %v684_v4 = vld [vmem:[#allocation7] sm:$0xff]   ;;  %vm131_vm1 = vcmask 261120   ;;  %v685_v5 = vld [vmem:[#allocation7 + $0x8] sm:$0xff]   ;;  %v686_v7 = vld [vmem:[#allocation7 + $0x10] sm:$0xff]   ;;  %vm533_vm2 = vcmask 7168  }
  0x5d   :  { %613 = vmatprep.subr.bf16.mxu1 %v831_v1  ;;  %629 = vmatprep.mubr.msk.bf16.mxu1 %vm832_vm0, %v831_v1  ;;  %v107_v6 = vld [vmem:[#allocation3] sm:$0xf]  ;;  %v687_v8 = vld [vmem:[#allocation7 + $0x18] sm:$0xff]   ;;  %v688_v9 = vld [vmem:[#allocation7 + $0x20] sm:$0xff]  }
  0x5e   :  { %606 = vmatpush3.bf16.msra.mxu0 %v682_v2  ;;  %614 = vmatpush3.bf16.msra.mxu1 %v684_v4  ;;  %v689_v10 = vld [vmem:[#allocation7 + $0x28] sm:$0xff]   ;;  %v690_v11 = vld [vmem:[#allocation7 + $0x30] sm:$0xff]   ;;  %v691_v12 = vld [vmem:[#allocation7 + $0x38] sm:$0xff]  }
  0x5f   :  { %607 = vmatprep.subr.bf16.mxu0 %v831_v1  ;;  %615 = vmatprep.subr.bf16.mxu1 %v831_v1  ;;  %v692_v13 = vld [vmem:[#allocation8] sm:$0xff]   ;;  %v693_v14 = vld [vmem:[#allocation8 + $0x8] sm:$0xff]   ;;  %v694_v15 = vld [vmem:[#allocation8 + $0x10] sm:$0xff]  }
  0x60   :  { %v695_v16 = vld [vmem:[#allocation8 + $0x18] sm:$0xff]   ;;  %v696_v17 = vld [vmem:[#allocation8 + $0x20] sm:$0xff]   ;;  %v697_v18 = vld [vmem:[#allocation8 + $0x28] sm:$0xff]  }
  0x61   :  { %v542_v19 = vld [vmem:[%s1022_s2] ss:$0 sm:$0xff]  ;;  %v698_v27 = vld [vmem:[#allocation8 + $0x30] sm:$0xff]   ;;  %v699_v28 = vld [vmem:[#allocation8 + $0x38] sm:$0xff]  }
  0x62   :  { %608 = vmatpush3.bf16.msra.mxu0 %v683_v3  ;;  %616 = vmatpush3.bf16.msra.mxu1 %v685_v5  ;;  %v700_v29 = vld [vmem:[#allocation10] sm:$0xff]   ;;  %v701_v30 = vld [vmem:[#allocation10 + $0x8] sm:$0xff]   ;;  %v702_v31 = vld [vmem:[#allocation10 + $0x10] sm:$0xff]  }
  0x63   :  { %633 = vmatprep.subr.bf16.mxu0 %v831_v1  ;;  %617 = vmatprep.subr.bf16.mxu1 %v831_v1  ;;  %v703_v32 = vld [vmem:[#allocation10 + $0x18] sm:$0xff]   ;;  %v704_v33 = vld [vmem:[#allocation10 + $0x20] sm:$0xff]   ;;  %v705_v34 = vld [vmem:[#allocation10 + $0x28] sm:$0xff]  }
  0x64   :  { %v546_v35 = vld [vmem:[%s1024_s4] ss:$0 sm:$0xff]  ;;  %v706_v43 = vld [vmem:[#allocation10 + $0x30] sm:$0xff]   ;;  %v707_v44 = vld [vmem:[#allocation10 + $0x38] sm:$0xff]  }
  0x65   :  { %610 = vmatmul.mubr.msk.bf16.vlgmr.msra.gmra.mrb[0].mxu0 %vm131_vm1, %v107_v6  ;;  %v555_v45 = vld [vmem:[%s1026_s6] ss:$0 sm:$0xff] }
  0x66   :  { %649 = vmatprep.mubr.msk.bf16.mxu0 %vm832_vm0, %v831_v1  ;;  %618 = vmatpush3.bf16.msra.mxu1 %v686_v7  ;;  %v564_v53 = vld [vmem:[%s1028_s8] ss:$0 sm:$0xff] }
  0x67   :  { %619 = vmatprep.subr.bf16.mxu1 %v831_v1  ;;  %634 = vmatpush3.bf16.msra.mxu0 %v692_v13  ;;  %v573_v58 = vld [vmem:[%s1029_s9] ss:$0 sm:$0xff] }
  0x68   :  { %635 = vmatprep.subr.bf16.mxu0 %v831_v1  ;;  %v574_v62 = vld [vmem:[#allocation2] ss:$0 sm:$0xff] }
  0x6a   :  { %620 = vmatpush3.bf16.msra.mxu1 %v687_v8 }
  0x6b   :  { %621 = vmatprep.subr.bf16.mxu1 %v831_v1  ;;  %636 = vmatpush3.bf16.msra.mxu0 %v693_v14 }
  0x6c   :  { %637 = vmatprep.subr.bf16.mxu0 %v831_v1 }
  0x6e   :  { %622 = vmatpush3.bf16.msra.mxu1 %v688_v9 }
  0x6f   :  { %623 = vmatprep.subr.bf16.mxu1 %v831_v1  ;;  %638 = vmatpush3.bf16.msra.mxu0 %v694_v15 }
  0x70   :  { %639 = vmatprep.subr.bf16.mxu0 %v831_v1 }
  0x72   :  { %624 = vmatpush3.bf16.msra.mxu1 %v689_v10 }
  0x73   :  { %625 = vmatprep.subr.bf16.mxu1 %v831_v1  ;;  %640 = vmatpush3.bf16.msra.mxu0 %v695_v16 }
  0x74   :  { %641 = vmatprep.subr.bf16.mxu0 %v831_v1 }
  0x76   :  { %626 = vmatpush3.bf16.msra.mxu1 %v690_v11 }
  0x77   :  { %627 = vmatprep.subr.bf16.mxu1 %v831_v1  ;;  %642 = vmatpush3.bf16.msra.mxu0 %v696_v17 }
  0x78   :  { %643 = vmatprep.subr.bf16.mxu0 %v831_v1 }
  0x7a   :  { %628 = vmatpush3.bf16.msra.mxu1 %v691_v12 }
  0x7b   :  { %653 = vmatprep.subr.bf16.mxu1 %v831_v1  ;;  %644 = vmatpush3.bf16.msra.mxu0 %v697_v18 }
  0x7c   :  { %645 = vmatprep.subr.bf16.mxu0 %v831_v1 }
  0x7f   :  { %646 = vmatpush3.bf16.msra.mxu0 %v698_v27 }
  0x80   :  { %647 = vmatprep.subr.bf16.mxu0 %v831_v1 }
  0x83   :  { %648 = vmatpush3.bf16.msra.mxu0 %v699_v28 }
 0x138   :  { %v169_v20 = vpop.f32.mrb[0].mxu0 }
 0x139   :  { %v170_v21 = vadd.f32 %v542_v19, %v169_v20  ;;  %v611_v22 = vpop.f32.mrb[1].mxu0 }
 0x13a   :  { %v172_v23 = vpop.f32.mrb[2].mxu0 }
 0x13b   :  { %v175_v24 = vmax.f32 %v170_v21, 0.0  ;;  %v612_v25 = vpop.f32.mrb[3].mxu0 }
 0x13d   :  { %v176_v26 = vpack.c.bf16 %v175_v24, %v175_v24 }
 0x13f   :  { %630 = vmatmul.mubr.bf16.vlgmr.msra.gmra.mrb[0].mxu1 %v176_v26 }
 0x140   :  { %669 = vmatprep.mubr.msk.bf16.mxu1 %vm832_vm0, %v831_v1  ;;  %654 = vmatpush3.bf16.msra.mxu1 %v700_v29 }
 0x141   :  { %655 = vmatprep.subr.bf16.mxu1 %v831_v1 }
 0x144   :  { %656 = vmatpush3.bf16.msra.mxu1 %v701_v30 }
 0x145   :  { %657 = vmatprep.subr.bf16.mxu1 %v831_v1 }
 0x148   :  { %658 = vmatpush3.bf16.msra.mxu1 %v702_v31 }
 0x149   :  { %659 = vmatprep.subr.bf16.mxu1 %v831_v1 }
 0x14c   :  { %660 = vmatpush3.bf16.msra.mxu1 %v703_v32 }
 0x14d   :  { %661 = vmatprep.subr.bf16.mxu1 %v831_v1 }
 0x150   :  { %662 = vmatpush3.bf16.msra.mxu1 %v704_v33 }
 0x151   :  { %663 = vmatprep.subr.bf16.mxu1 %v831_v1 }
 0x154   :  { %664 = vmatpush3.bf16.msra.mxu1 %v705_v34 }
 0x155   :  { %665 = vmatprep.subr.bf16.mxu1 %v831_v1 }
 0x158   :  { %666 = vmatpush3.bf16.msra.mxu1 %v706_v43 }
 0x159   :  { %667 = vmatprep.subr.bf16.mxu1 %v831_v1 }
 0x15c   :  { %668 = vmatpush3.bf16.msra.mxu1 %v707_v44 }
 0x212   :  { %v282_v36 = vpop.f32.mrb[0].mxu1 }
 0x213   :  { %v283_v37 = vadd.f32 %v546_v35, %v282_v36  ;;  %v631_v38 = vpop.f32.mrb[1].mxu1 }
 0x214   :  { %v285_v39 = vpop.f32.mrb[2].mxu1 }
 0x215   :  { %v288_v40 = vmax.f32 %v283_v37, 0.0  ;;  %v632_v41 = vpop.f32.mrb[3].mxu1 }
 0x217   :  { %v289_v42 = vpack.c.bf16 %v288_v40, %v288_v40 }
 0x219   :  { %650 = vmatmul.mubr.bf16.vlgmr.msra.gmra.mrb[4].mxu0 %v289_v42 }
 0x2ec   :  { %v395_v46 = vpop.f32.mrb[4].mxu0 }
 0x2ed   :  { %v396_v47 = vadd.f32 %v555_v45, %v395_v46  ;;  %v651_v48 = vpop.f32.mrb[5].mxu0 }
 0x2ee   :  { %v398_v49 = vpop.f32.mrb[6].mxu0 }
 0x2ef   :  { %v401_v50 = vmax.f32 %v396_v47, 0.0  ;;  %v652_v51 = vpop.f32.mrb[7].mxu0 }
 0x2f1   :  { %v402_v52 = vpack.c.bf16 %v401_v50, %v401_v50 }
 0x2f3   :  { %670 = vmatmul.mubr.bf16.vlgmr.msra.gmra.mrb[4].mxu1 %v402_v52 }
 0x3c6   :  { %v508_v54 = vpop.f32.mrb[4].mxu1 }
 0x3c7   :  { %v509_v55 = vadd.f32 %v564_v53, %v508_v54  ;;  %v671_v56 = vpop.f32.mrb[5].mxu1 }
 0x3c8   :  { %v511_v57 = vpop.f32.mrb[6].mxu1 }
 0x3c9   :  { %v514_v59 = vmax.f32 %v509_v55, 0.0  ;;  %v672_v60 = vpop.f32.mrb[7].mxu1 }
 0x3cb   :  { %v522_v61 = vmul.f32 %v573_v58, %v514_v59 }
 0x3cd   :  { %523 = vadd.xlane.f32.xlu0 %v522_v61 }
 0x45a   :  { %v524_v63 = vpop.xlane.xlu0 %523 }
 0x45b   :  { %v532_v0 = vadd.f32 %v574_v62, %v524_v63 }
 0x45d   :  { %534 = vst.msk [vmem:[%s1031_s11] sm:$0xff] %vm533_vm2, %v532_v0 }
 0x45e   :  { %539 = vsyncpa [#allocation4], 1 }
 0x45f   :  { %540 = vsyncpa [#allocation6], 1 }
 0x460   :  { %541 = vsyncpa [#allocation9], 1 }

</bundles_post_ra>
